<compile_context>
chip_gen: v7x
topology: tpu7x:2x2x1
jax: 0.10.0
libtpu: 0.0.40
codegen_flags: <defaults>
</compile_context>

<pallas_src>
import functools
import math

import jax
import jax.numpy as jnp
from jax.experimental import pallas as pl
from jax.experimental.pallas import tpu as pltpu

EPS = 1e-5
DROPOUT = 0.1  # Dropout2d == identity at inference; kept for parity with the module.


# ----------------------------- Pallas kernel -------------------------------- #
def _transition_block_kernel(
    x_ref,      # (Cin, NFT)   input, lane r = n*FT_pad + f*T + t, f32 (pad freqs = 0)
    w1_ref,     # (Cout, Cin)          f2[0]: 1x1 quat conv, BN1 scale folded, bf16
    b1_ref,     # (Cout, NFT)          BN1-folded bias, zero on pad lanes, f32
    w2_ref,     # (3, Cout, Cout)      f2[3]: (3,1) freq-conv taps, bf16
    ssn_s_ref,  # (Cout, NFT)          folded SubSpectralNorm scale (0 on pads), f32
    ssn_b_ref,  # (Cout, NFT)          folded SubSpectralNorm shift incl. b2 (0 on pads), f32
    M_ref,      # (NFT, NTp)           frequency-mean matrix (1/F weights), bf16
    w3_ref,     # (3, Cout, Cout)      f1[0]: (1,3) dilated time-conv taps, BN2 folded, bf16
    b34_ref,    # (Cout, 2)            [b3 (BN2-folded), b4], f32
    w4_ref,     # (Cout, Cout)         f1[3]: 1x1 quat conv, bf16
    Bt_ref,     # (NTp, NFT)           frequency-broadcast selector, bf16
    o_ref,      # (Cout, NFT)          output, f32
    *, n_time, dilation,
):
    nft = x_ref.shape[1]
    cout = w1_ref.shape[0]
    T = n_time
    d = dilation

    x = x_ref[...].astype(jnp.bfloat16)                                 # (Cin, NFT)

    # ---- f2: 1x1 quaternion conv + BatchNorm (folded) + ReLU.
    #      b1 is zero on pad lanes, so pad freqs of y stay exactly 0.
    y = jnp.dot(w1_ref[...], x, preferred_element_type=jnp.float32) + b1_ref[...]
    y = jnp.maximum(y, 0.0)                                             # (Cout, NFT) f32

    # ---- f2: (3,1) conv over frequency ('same', stride 1).
    #      freq +-1 == lane rotate by +-T (XLU); per-batch zero pad freqs make the
    #      wrap-around values the 'same'-padding zeros.  Three accumulating dots.
    y_lo = pltpu.roll(y, T, axis=1)            # y at freq f-1
    y_hi = pltpu.roll(y, nft - T, axis=1)      # y at freq f+1
    z = jnp.dot(w2_ref[0], y_lo.astype(jnp.bfloat16), preferred_element_type=jnp.float32)
    z += jnp.dot(w2_ref[1], y.astype(jnp.bfloat16), preferred_element_type=jnp.float32)
    z += jnp.dot(w2_ref[2], y_hi.astype(jnp.bfloat16), preferred_element_type=jnp.float32)

    # ---- f2: SubSpectralNorm folded to a per-(channel, freq) affine; pad lanes -> 0.
    z = z * ssn_s_ref[...] + ssn_b_ref[...]                             # (Cout, NFT) f32

    # ---- frequency mean (keepdim) via one MXU matmul into a per-batch
    #      zero-padded time axis: (Cout, NFT) @ (NFT, NTp) -> (Cout, NTp).
    m = jnp.dot(z.astype(jnp.bfloat16), M_ref[...],
                preferred_element_type=jnp.float32).astype(jnp.bfloat16)
    ntp = m.shape[1]

    # ---- f1: (1,3) dilated conv ('same') — per-batch pad t-slots (zeros) provide
    #      the 'same'-padding edges, so a plain global shift is correct.
    zd = jnp.zeros((cout, d), jnp.bfloat16)
    m_lo = jnp.concatenate([zd, m[:, : ntp - d]], axis=1)               # m at t-d
    m_hi = jnp.concatenate([m[:, d:], zd], axis=1)                      # m at t+d
    a = jnp.dot(w3_ref[0], m_lo, preferred_element_type=jnp.float32)
    a += jnp.dot(w3_ref[1], m, preferred_element_type=jnp.float32)
    a += jnp.dot(w3_ref[2], m_hi, preferred_element_type=jnp.float32)
    a += b34_ref[:, 0:1]                                                # BN2-folded bias
    a = a * jax.nn.sigmoid(a)                                           # SiLU (EUP)

    # ---- f1: 1x1 quaternion conv (+ Dropout2d == identity at inference)
    a = jnp.dot(w4_ref[...], a.astype(jnp.bfloat16),
                preferred_element_type=jnp.float32) + b34_ref[:, 1:2]   # (Cout, NTp)

    # ---- broadcast over frequency (x1.repeat) via MXU, residual add, final ReLU
    a_full = jnp.dot(a.astype(jnp.bfloat16), Bt_ref[...],
                     preferred_element_type=jnp.float32)                # (Cout, NFT)
    o_ref[...] = jnp.maximum(z + a_full, 0.0)


# ------------------ one-time parameter folding (hoisted) --------------------- #
def _round_up(a, b):
    return ((a + b - 1) // b) * b


def prepare_params(P, *, n_batch, n_freq, n_time, dilation, n_subbands):
    """Fold BN/SSN, stack conv taps, build padded lane tables & mean/broadcast
    matrices.  Runs ONCE; results are reused by every forward call."""
    N, F, T, d = n_batch, n_freq, n_time, dilation
    Cout = P["W1"].shape[0]
    assert 0 < d < T
    assert F % n_subbands == 0

    # lane padding: F*T rounded up to a multiple of lcm(T, 128), with >= 1 pad freq
    lcm = T * 128 // math.gcd(T, 128)
    ft_pad = _round_up(F * T + T, lcm)
    f_pad = ft_pad // T
    NFT = N * ft_pad

    # mean-domain lanes: per batch [T real time slots | T zero pad slots]
    t_pad = 2 * T
    NTp = N * t_pad

    # lane decompositions
    r = jnp.arange(NFT)
    r_n, r_rem = r // ft_pad, r % ft_pad
    r_f, r_t = r_rem // T, r_rem % T
    real_f = r_f < F                                              # (NFT,) bool

    j = jnp.arange(NTp)
    j_n, j_t = j // t_pad, j % t_pad
    real_j = j_t < T                                              # (NTp,) bool

    # frequency-mean matrix  (NFT, NTp)  and frequency-broadcast selector (NTp, NFT)
    M = ((r_n[:, None] == j_n[None, :]) & (r_t[:, None] == j_t[None, :])
         & real_f[:, None] & real_j[None, :]).astype(jnp.float32) / F
    Bt = ((j_n[:, None] == r_n[None, :]) & (j_t[:, None] == r_t[None, :])
          & real_j[:, None]).astype(jnp.float32)

    # f2[0..2]: 1x1 conv + BN1 fold
    s1 = P["bn1_scale"]
    w1 = (s1[:, None] * P["W1"][:, :, 0, 0]).astype(jnp.bfloat16)        # (Cout, Cin)
    b1 = s1 * P["b1"] + P["bn1_shift"]                                   # (Cout,)
    b1_lanes = jnp.where(real_f[None, :], b1[:, None], 0.0)              # (Cout, NFT)

    # f2[3]: (3,1) freq conv taps
    w2 = jnp.stack([P["W2"][:, :, k, 0] for k in range(3)], 0).astype(jnp.bfloat16)

    # f2[4]: SubSpectralNorm folded to per-(channel, freq) affine, conv bias b2 folded in
    scale_cs = P["ssn_scale_flat"].reshape(Cout, n_subbands)
    shift_cs = P["ssn_shift_flat"].reshape(Cout, n_subbands)
    group_of_f = jnp.arange(F) // (F // n_subbands)
    scale_cf = scale_cs[:, group_of_f]                                   # (Cout, F)
    shift_cf = scale_cf * P["b2"][:, None] + shift_cs[:, group_of_f]     # (Cout, F)
    gather_f = jnp.clip(r_f, 0, F - 1)
    ssn_s = jnp.where(real_f[None, :], scale_cf[:, gather_f], 0.0)       # (Cout, NFT)
    ssn_b = jnp.where(real_f[None, :], shift_cf[:, gather_f], 0.0)

    # f1[0..2]: (1,3) dilated time conv taps + BN2 fold
    s3 = P["bn2_scale"]
    w3 = jnp.stack([s3[:, None] * P["W3"][:, :, 0, k] for k in range(3)], 0).astype(jnp.bfloat16)
    b3 = s3 * P["b3"] + P["bn2_shift"]

    # f1[3]: 1x1 conv
    w4 = P["W4"][:, :, 0, 0].astype(jnp.bfloat16)
    b34 = jnp.stack([b3, P["b4"]], axis=1)                               # (Cout, 2)

    return {
        "w1": w1, "b1_lanes": b1_lanes, "w2": w2,
        "ssn_s": ssn_s, "ssn_b": ssn_b,
        "M": M.astype(jnp.bfloat16), "w3": w3, "b34": b34,
        "w4": w4, "Bt": Bt.astype(jnp.bfloat16),
    }


# --------------------------- per-call wrapper (jitted) ----------------------- #
@functools.partial(jax.jit, static_argnames=("dilation",))
def transition_block_pallas(x_nchw, prep, *, dilation):
    N, Cin, F, T = x_nchw.shape
    Cout = prep["w1"].shape[0]
    NFT = prep["b1_lanes"].shape[1]
    NTp = prep["Bt"].shape[0]
    ft_pad = NFT // N
    f_pad = ft_pad // T

    # pad freq rows with zeros and lay out channel-major with the batch merged
    # into the lane axis: (Cin, N*ft_pad)
    x_p = jnp.pad(x_nchw, ((0, 0), (0, 0), (0, f_pad - F), (0, 0)))
    x_flat = jnp.transpose(x_p, (1, 0, 2, 3)).reshape(Cin, NFT)

    kernel = functools.partial(_transition_block_kernel, n_time=T, dilation=dilation)

    flops = 2 * (Cin * Cout * NFT          # 1x1 conv
                 + 3 * Cout * Cout * NFT   # (3,1) freq conv
                 + Cout * NFT * NTp        # frequency mean
                 + 3 * Cout * Cout * NTp   # (1,3) dilated time conv
                 + Cout * Cout * NTp       # 1x1 conv
                 + Cout * NTp * NFT)       # frequency broadcast
    bytes_accessed = (int(x_flat.size) * 4 + Cout * NFT * 4
                      + sum(int(v.size) * v.dtype.itemsize for v in prep.values()))

    out_flat = pl.pallas_call(
        kernel,
        out_shape=jax.ShapeDtypeStruct((Cout, NFT), jnp.float32),
        cost_estimate=pl.CostEstimate(flops=flops,
                                      transcendentals=Cout * NTp,
                                      bytes_accessed=bytes_accessed),
    )(x_flat, prep["w1"], prep["b1_lanes"], prep["w2"], prep["ssn_s"],
      prep["ssn_b"], prep["M"], prep["w3"], prep["b34"], prep["w4"], prep["Bt"])

    # un-merge batch, un-pad freq: (Cout, NFT) -> (N, Cout, F, T)
    out = out_flat.reshape(Cout, N, f_pad, T)
    out = jnp.transpose(out, (1, 0, 2, 3))[:, :, :F, :]
    return out


# --------------------- deterministic parameter construction ------------------ #
def _quaternion_conv_weight(key, out_c, in_c, kh, kw, scale=0.3):
    """Dense conv weight (out_c, in_c, kh, kw) with Hamilton-product structure."""
    qo, qi = out_c // 4, in_c // 4
    kr, ki, kj, kk = jax.random.split(key, 4)
    r = scale * jax.random.normal(kr, (qo, qi, kh, kw), jnp.float32)
    i = scale * jax.random.normal(ki, (qo, qi, kh, kw), jnp.float32)
    j = scale * jax.random.normal(kj, (qo, qi, kh, kw), jnp.float32)
    k = scale * jax.random.normal(kk, (qo, qi, kh, kw), jnp.float32)
    row_r = jnp.concatenate([r, -i, -j, -k], axis=1)
    row_i = jnp.concatenate([i, r, -k, j], axis=1)
    row_j = jnp.concatenate([j, k, r, -i], axis=1)
    row_k = jnp.concatenate([k, -j, i, r], axis=1)
    return jnp.concatenate([row_r, row_i, row_j, row_k], axis=0)


def _bn_affine(key, c):
    kg, kb, km, kv = jax.random.split(key, 4)
    gamma = 1.0 + 0.1 * jax.random.normal(kg, (c,), jnp.float32)
    beta = 0.1 * jax.random.normal(kb, (c,), jnp.float32)
    rmean = 0.1 * jax.random.normal(km, (c,), jnp.float32)
    rvar = jax.random.uniform(kv, (c,), jnp.float32, 0.5, 1.5)
    scale = gamma / jnp.sqrt(rvar + EPS)
    shift = beta - rmean * scale
    return scale, shift


def make_params(key, in_chan, out_chan, n_subbands):
    ks = jax.random.split(key, 11)
    P = {}
    P["W1"] = _quaternion_conv_weight(ks[0], out_chan, in_chan, 1, 1)
    P["b1"] = 0.05 * jax.random.normal(ks[1], (out_chan,), jnp.float32)
    P["bn1_scale"], P["bn1_shift"] = _bn_affine(ks[2], out_chan)
    P["W2"] = _quaternion_conv_weight(ks[3], out_chan, out_chan, 3, 1)
    P["b2"] = 0.05 * jax.random.normal(ks[4], (out_chan,), jnp.float32)
    P["ssn_scale_flat"], P["ssn_shift_flat"] = _bn_affine(ks[5], out_chan * n_subbands)
    P["W3"] = _quaternion_conv_weight(ks[6], out_chan, out_chan, 1, 3)
    P["b3"] = 0.05 * jax.random.normal(ks[7], (out_chan,), jnp.float32)
    P["bn2_scale"], P["bn2_shift"] = _bn_affine(ks[8], out_chan)
    P["W4"] = _quaternion_conv_weight(ks[9], out_chan, out_chan, 1, 1)
    P["b4"] = 0.05 * jax.random.normal(ks[10], (out_chan,), jnp.float32)
    return P


# ----------------------- independent pure-JAX reference ---------------------- #
def reference_forward(x_nchw, P, dilation, n_subbands):
    hp = jax.lax.Precision.HIGHEST
    N, Cin, Fq, T = x_nchw.shape
    Cout = P["W1"].shape[0]

    # f2[0..2]: 1x1 conv + BN + ReLU
    y = jnp.einsum("oc,ncft->noft", P["W1"][:, :, 0, 0], x_nchw, precision=hp)
    y = y + P["b1"][None, :, None, None]
    y = P["bn1_scale"][None, :, None, None] * y + P["bn1_shift"][None, :, None, None]
    y = jnp.maximum(y, 0.0)

    # f2[3]: (3,1) conv, 'same' padding (freq pad 1), stride 1
    yp = jnp.pad(y, ((0, 0), (0, 0), (1, 1), (0, 0)))
    z = jnp.zeros((N, Cout, Fq, T), jnp.float32)
    for kh in range(3):
        z = z + jnp.einsum("oc,ncft->noft", P["W2"][:, :, kh, 0],
                           yp[:, :, kh:kh + Fq, :], precision=hp)
    z = z + P["b2"][None, :, None, None]

    # f2[4]: SubSpectralNorm (inference affine over C*S channels)
    zr = z.reshape(N, Cout * n_subbands, Fq // n_subbands, T)
    zr = (P["ssn_scale_flat"][None, :, None, None] * zr
          + P["ssn_shift_flat"][None, :, None, None])
    z = zr.reshape(N, Cout, Fq, T)

    # frequency mean
    x1 = jnp.mean(z, axis=2, keepdims=True)                  # (N, Cout, 1, T)

    # f1[0..2]: (1,3) dilated conv ('same') + BN + SiLU
    x1p = jnp.pad(x1, ((0, 0), (0, 0), (0, 0), (dilation, dilation)))
    a = jnp.zeros((N, Cout, 1, T), jnp.float32)
    for kw in range(3):
        a = a + jnp.einsum("oc,ncft->noft", P["W3"][:, :, 0, kw],
                           x1p[:, :, :, kw * dilation:kw * dilation + T], precision=hp)
    a = a + P["b3"][None, :, None, None]
    a = P["bn2_scale"][None, :, None, None] * a + P["bn2_shift"][None, :, None, None]
    a = a * jax.nn.sigmoid(a)

    # f1[3..4]: 1x1 conv + Dropout2d (identity)
    a = jnp.einsum("oc,ncft->noft", P["W4"][:, :, 0, 0], a, precision=hp)
    a = a + P["b4"][None, :, None, None]

    # residual (x1 broadcast over freq) + ReLU
    return jnp.maximum(z + a, 0.0)


# ----------------------------------- main ------------------------------------ #
if __name__ == "__main__":
    N, in_chan, out_chan = 2, 8, 16          # channels divisible by 4 (quaternion)
    Fq, T = 20, 16                           # Fq divisible by 5 (SubSpectralNorm S=5)
    dilation, n_subbands = 1, 5

    key = jax.random.PRNGKey(0)
    kx, kp = jax.random.split(key)
    x = jax.random.normal(kx, (N, in_chan, Fq, T), jnp.float32)   # NCHW like PyTorch
    P = make_params(kp, in_chan, out_chan, n_subbands)

    # one-time (hoisted) parameter folding — NOT part of the per-call path
    prep = prepare_params(P, n_batch=N, n_freq=Fq, n_time=T,
                          dilation=dilation, n_subbands=n_subbands)

    out = transition_block_pallas(x, prep, dilation=dilation)
    out = jax.block_until_ready(out)

    ref = reference_forward(x, P, dilation, n_subbands)
    assert out.shape == (N, out_chan, Fq, T), out.shape
    err = float(jnp.max(jnp.abs(out - ref)))
    scale = float(jnp.max(jnp.abs(ref))) + 1e-6
    # bf16 MXU operands (f32 accumulation) vs. the f32 HIGHEST-precision
    # reference: expect <~1% relative error.
    assert err / scale < 2e-2, (err, scale)

    print("KERNEL_OK")
</pallas_src>

<mosaic_0001>
module attributes {stable_mosaic.version = 11 : i64} {
  func.func @_transition_block_kernel(%arg0: memref<8x768xf32, #tpu.memory_space<vmem>>, %arg1: memref<16x8xbf16, #tpu.memory_space<vmem>>, %arg2: memref<16x768xf32, #tpu.memory_space<vmem>>, %arg3: memref<3x16x16xbf16, #tpu.memory_space<vmem>>, %arg4: memref<16x768xf32, #tpu.memory_space<vmem>>, %arg5: memref<16x768xf32, #tpu.memory_space<vmem>>, %arg6: memref<768x64xbf16, #tpu.memory_space<vmem>>, %arg7: memref<3x16x16xbf16, #tpu.memory_space<vmem>>, %arg8: memref<16x2xf32, #tpu.memory_space<vmem>>, %arg9: memref<16x16xbf16, #tpu.memory_space<vmem>>, %arg10: memref<64x768xbf16, #tpu.memory_space<vmem>>, %arg11: memref<16x768xf32, #tpu.memory_space<vmem>>) attributes {dimension_semantics = [], scalar_prefetch = 0 : i64, scratch_operands = 0 : i64, tpu.core_type = #tpu.core_type<tc>} {
    %c0 = arith.constant 0 : index
    %c0_0 = arith.constant 0 : index
    %0 = vector.load %arg0[%c0, %c0_0] : memref<8x768xf32, #tpu.memory_space<vmem>>, vector<8x768xf32>
    %1 = arith.truncf %0 : vector<8x768xf32> to vector<8x768xbf16>
    %c0_1 = arith.constant 0 : index
    %c0_2 = arith.constant 0 : index
    %2 = vector.load %arg1[%c0_1, %c0_2] : memref<16x8xbf16, #tpu.memory_space<vmem>>, vector<16x8xbf16>
    %cst = arith.constant dense<0.000000e+00> : vector<16x768xf32>
    %3 = tpu.matmul %2, %1, %cst {dimension_numbers = #tpu.dot_dimension_numbers<[1], [0], [0], [1], [0, 0, 1, 1], [], []>} : vector<16x8xbf16>, vector<8x768xbf16>, vector<16x768xf32> -> vector<16x768xf32>
    %c0_3 = arith.constant 0 : index
    %c0_4 = arith.constant 0 : index
    %4 = vector.load %arg2[%c0_3, %c0_4] : memref<16x768xf32, #tpu.memory_space<vmem>>, vector<16x768xf32>
    %5 = arith.addf %3, %4 : vector<16x768xf32>
    %cst_5 = arith.constant 0.000000e+00 : f32
    %6 = vector.broadcast %cst_5 : f32 to vector<16x768xf32>
    %7 = arith.maximumf %5, %6 : vector<16x768xf32>
    %c16_i32 = arith.constant 16 : i32
    %8 = tpu.dynamic_rotate %7 by %c16_i32 dim 1 : vector<16x768xf32>, i32 -> vector<16x768xf32>
    %c752_i32 = arith.constant 752 : i32
    %9 = tpu.dynamic_rotate %7 by %c752_i32 dim 1 : vector<16x768xf32>, i32 -> vector<16x768xf32>
    %c0_6 = arith.constant 0 : index
    %c0_7 = arith.constant 0 : index
    %c0_8 = arith.constant 0 : index
    %10 = vector.load %arg3[%c0_6, %c0_7, %c0_8] : memref<3x16x16xbf16, #tpu.memory_space<vmem>>, vector<1x16x16xbf16>
    %11 = vector.shape_cast %10 : vector<1x16x16xbf16> to vector<16x16xbf16>
    %12 = arith.truncf %8 : vector<16x768xf32> to vector<16x768xbf16>
    %cst_9 = arith.constant dense<0.000000e+00> : vector<16x768xf32>
    %13 = tpu.matmul %11, %12, %cst_9 {dimension_numbers = #tpu.dot_dimension_numbers<[1], [0], [0], [1], [0, 0, 1, 1], [], []>} : vector<16x16xbf16>, vector<16x768xbf16>, vector<16x768xf32> -> vector<16x768xf32>
    %c1 = arith.constant 1 : index
    %c0_10 = arith.constant 0 : index
    %c0_11 = arith.constant 0 : index
    %14 = vector.load %arg3[%c1, %c0_10, %c0_11] : memref<3x16x16xbf16, #tpu.memory_space<vmem>>, vector<1x16x16xbf16>
    %15 = vector.shape_cast %14 : vector<1x16x16xbf16> to vector<16x16xbf16>
    %16 = arith.truncf %7 : vector<16x768xf32> to vector<16x768xbf16>
    %cst_12 = arith.constant dense<0.000000e+00> : vector<16x768xf32>
    %17 = tpu.matmul %15, %16, %cst_12 {dimension_numbers = #tpu.dot_dimension_numbers<[1], [0], [0], [1], [0, 0, 1, 1], [], []>} : vector<16x16xbf16>, vector<16x768xbf16>, vector<16x768xf32> -> vector<16x768xf32>
    %18 = arith.addf %13, %17 : vector<16x768xf32>
    %c2 = arith.constant 2 : index
    %c0_13 = arith.constant 0 : index
    %c0_14 = arith.constant 0 : index
    %19 = vector.load %arg3[%c2, %c0_13, %c0_14] : memref<3x16x16xbf16, #tpu.memory_space<vmem>>, vector<1x16x16xbf16>
    %20 = vector.shape_cast %19 : vector<1x16x16xbf16> to vector<16x16xbf16>
    %21 = arith.truncf %9 : vector<16x768xf32> to vector<16x768xbf16>
    %cst_15 = arith.constant dense<0.000000e+00> : vector<16x768xf32>
    %22 = tpu.matmul %20, %21, %cst_15 {dimension_numbers = #tpu.dot_dimension_numbers<[1], [0], [0], [1], [0, 0, 1, 1], [], []>} : vector<16x16xbf16>, vector<16x768xbf16>, vector<16x768xf32> -> vector<16x768xf32>
    %23 = arith.addf %18, %22 : vector<16x768xf32>
    %c0_16 = arith.constant 0 : index
    %c0_17 = arith.constant 0 : index
    %24 = vector.load %arg4[%c0_16, %c0_17] : memref<16x768xf32, #tpu.memory_space<vmem>>, vector<16x768xf32>
    %25 = arith.mulf %23, %24 : vector<16x768xf32>
    %c0_18 = arith.constant 0 : index
    %c0_19 = arith.constant 0 : index
    %26 = vector.load %arg5[%c0_18, %c0_19] : memref<16x768xf32, #tpu.memory_space<vmem>>, vector<16x768xf32>
    %27 = arith.addf %25, %26 : vector<16x768xf32>
    %28 = arith.truncf %27 : vector<16x768xf32> to vector<16x768xbf16>
    %c0_20 = arith.constant 0 : index
    %c0_21 = arith.constant 0 : index
    %29 = vector.load %arg6[%c0_20, %c0_21] : memref<768x64xbf16, #tpu.memory_space<vmem>>, vector<768x64xbf16>
    %cst_22 = arith.constant dense<0.000000e+00> : vector<16x64xf32>
    %30 = tpu.matmul %28, %29, %cst_22 {dimension_numbers = #tpu.dot_dimension_numbers<[1], [0], [0], [1], [0, 0, 1, 1], [], []>} : vector<16x768xbf16>, vector<768x64xbf16>, vector<16x64xf32> -> vector<16x64xf32>
    %31 = arith.truncf %30 : vector<16x64xf32> to vector<16x64xbf16>
    %cst_23 = arith.constant 0.000000e+00 : bf16
    %32 = vector.broadcast %cst_23 : bf16 to vector<16x1xbf16>
    %33 = vector.extract_strided_slice %31 {offsets = [0, 0], sizes = [16, 63], strides = [1, 1]} : vector<16x64xbf16> to vector<16x63xbf16>
    %34 = tpu.concatenate %32, %33 in 1 : vector<16x1xbf16>, vector<16x63xbf16> -> vector<16x64xbf16>
    %35 = vector.extract_strided_slice %31 {offsets = [0, 1], sizes = [16, 63], strides = [1, 1]} : vector<16x64xbf16> to vector<16x63xbf16>
    %36 = tpu.concatenate %35, %32 in 1 : vector<16x63xbf16>, vector<16x1xbf16> -> vector<16x64xbf16>
    %c0_24 = arith.constant 0 : index
    %c0_25 = arith.constant 0 : index
    %c0_26 = arith.constant 0 : index
    %37 = vector.load %arg7[%c0_24, %c0_25, %c0_26] : memref<3x16x16xbf16, #tpu.memory_space<vmem>>, vector<1x16x16xbf16>
    %38 = vector.shape_cast %37 : vector<1x16x16xbf16> to vector<16x16xbf16>
    %cst_27 = arith.constant dense<0.000000e+00> : vector<16x64xf32>
    %39 = tpu.matmul %38, %34, %cst_27 {dimension_numbers = #tpu.dot_dimension_numbers<[1], [0], [0], [1], [0, 0, 1, 1], [], []>} : vector<16x16xbf16>, vector<16x64xbf16>, vector<16x64xf32> -> vector<16x64xf32>
    %c1_28 = arith.constant 1 : index
    %c0_29 = arith.constant 0 : index
    %c0_30 = arith.constant 0 : index
    %40 = vector.load %arg7[%c1_28, %c0_29, %c0_30] : memref<3x16x16xbf16, #tpu.memory_space<vmem>>, vector<1x16x16xbf16>
    %41 = vector.shape_cast %40 : vector<1x16x16xbf16> to vector<16x16xbf16>
    %cst_31 = arith.constant dense<0.000000e+00> : vector<16x64xf32>
    %42 = tpu.matmul %41, %31, %cst_31 {dimension_numbers = #tpu.dot_dimension_numbers<[1], [0], [0], [1], [0, 0, 1, 1], [], []>} : vector<16x16xbf16>, vector<16x64xbf16>, vector<16x64xf32> -> vector<16x64xf32>
    %43 = arith.addf %39, %42 : vector<16x64xf32>
    %c2_32 = arith.constant 2 : index
    %c0_33 = arith.constant 0 : index
    %c0_34 = arith.constant 0 : index
    %44 = vector.load %arg7[%c2_32, %c0_33, %c0_34] : memref<3x16x16xbf16, #tpu.memory_space<vmem>>, vector<1x16x16xbf16>
    %45 = vector.shape_cast %44 : vector<1x16x16xbf16> to vector<16x16xbf16>
    %cst_35 = arith.constant dense<0.000000e+00> : vector<16x64xf32>
    %46 = tpu.matmul %45, %36, %cst_35 {dimension_numbers = #tpu.dot_dimension_numbers<[1], [0], [0], [1], [0, 0, 1, 1], [], []>} : vector<16x16xbf16>, vector<16x64xbf16>, vector<16x64xf32> -> vector<16x64xf32>
    %47 = arith.addf %43, %46 : vector<16x64xf32>
    %c0_36 = arith.constant 0 : index
    %c0_37 = arith.constant 0 : index
    %48 = vector.load %arg8[%c0_36, %c0_37] : memref<16x2xf32, #tpu.memory_space<vmem>>, vector<16x1xf32>
    %49 = vector.broadcast %48 : vector<16x1xf32> to vector<16x64xf32>
    %50 = arith.addf %47, %49 : vector<16x64xf32>
    %51 = arith.negf %50 : vector<16x64xf32>
    %52 = math.exp %51 : vector<16x64xf32>
    %cst_38 = arith.constant 1.000000e+00 : f32
    %53 = vector.broadcast %cst_38 : f32 to vector<16x64xf32>
    %54 = arith.addf %53, %52 : vector<16x64xf32>
    %55 = arith.divf %53, %54 : vector<16x64xf32>
    %56 = arith.mulf %50, %55 : vector<16x64xf32>
    %c0_39 = arith.constant 0 : index
    %c0_40 = arith.constant 0 : index
    %57 = vector.load %arg9[%c0_39, %c0_40] : memref<16x16xbf16, #tpu.memory_space<vmem>>, vector<16x16xbf16>
    %58 = arith.truncf %56 : vector<16x64xf32> to vector<16x64xbf16>
    %cst_41 = arith.constant dense<0.000000e+00> : vector<16x64xf32>
    %59 = tpu.matmul %57, %58, %cst_41 {dimension_numbers = #tpu.dot_dimension_numbers<[1], [0], [0], [1], [0, 0, 1, 1], [], []>} : vector<16x16xbf16>, vector<16x64xbf16>, vector<16x64xf32> -> vector<16x64xf32>
    %c0_42 = arith.constant 0 : index
    %c1_43 = arith.constant 1 : index
    %60 = vector.load %arg8[%c0_42, %c1_43] : memref<16x2xf32, #tpu.memory_space<vmem>>, vector<16x1xf32>
    %61 = vector.broadcast %60 : vector<16x1xf32> to vector<16x64xf32>
    %62 = arith.addf %59, %61 : vector<16x64xf32>
    %63 = arith.truncf %62 : vector<16x64xf32> to vector<16x64xbf16>
    %c0_44 = arith.constant 0 : index
    %c0_45 = arith.constant 0 : index
    %64 = vector.load %arg10[%c0_44, %c0_45] : memref<64x768xbf16, #tpu.memory_space<vmem>>, vector<64x768xbf16>
    %cst_46 = arith.constant dense<0.000000e+00> : vector<16x768xf32>
    %65 = tpu.matmul %63, %64, %cst_46 {dimension_numbers = #tpu.dot_dimension_numbers<[1], [0], [0], [1], [0, 0, 1, 1], [], []>} : vector<16x64xbf16>, vector<64x768xbf16>, vector<16x768xf32> -> vector<16x768xf32>
    %66 = arith.addf %27, %65 : vector<16x768xf32>
    %cst_47 = arith.constant 0.000000e+00 : f32
    %67 = vector.broadcast %cst_47 : f32 to vector<16x768xf32>
    %68 = arith.maximumf %66, %67 : vector<16x768xf32>
    %c0_48 = arith.constant 0 : index
    %c0_49 = arith.constant 0 : index
    %69 = vector.load %arg11[%c0_48, %c0_49] : memref<16x768xf32, #tpu.memory_space<vmem>>, vector<16x768xf32>
    tpu.vector_store %arg11[%c0_48, %c0_49], %68 {strides = array<i32>} : memref<16x768xf32, #tpu.memory_space<vmem>>, vector<16x768xf32>,
    return
  }
}

</mosaic_0001>

<bundles_post_ra>
// kernel: transition_block_pallas.1
= control target key start
LH: loop header
LB: loop body
LE: loop exit
PB: predicated region body
PF: predicated region fallthrough
CT: control target
= control target key end

     0   :  { %vm74_vm0 = vcmask 1043456   ;;  %v2307_v3 = vmov 0   ;;  %vm70_vm1 = vcmask 64512   ;;  %vm332_vm2 = vcmask 130048   ;;  %s2935_s0 = inlined_call_operand.vmem [shape: f32[8,768], index: 0, kind: input, shape index: {}]   ;;  %s2936_s1 = inlined_call_operand.vmem [shape: bf16[16,8], index: 1, kind: input, shape index: {}]   ;;  %s2937_s3 = inlined_call_operand.vmem [shape: bf16[3,16,16], index: 3, kind: input, shape index: {}]   ;;  %s2938_s2 = inlined_call_operand.vmem [shape: f32[16,768], index: 2, kind: input, shape index: {}]   ;;  %s2939_s6 = inlined_call_operand.vmem [shape: bf16[768,64], index: 6, kind: input, shape index: {}]   ;;  %s2940_s4 = inlined_call_operand.vmem [shape: f32[16,768], index: 4, kind: input, shape index: {}]   ;;  %s2941_s5 = inlined_call_operand.vmem [shape: f32[16,768], index: 5, kind: input, shape index: {}]   ;;  %s2942_s7 = inlined_call_operand.vmem [shape: bf16[3,16,16], index: 7, kind: input, shape index: {}]   ;;  %s2943_s8 = inlined_call_operand.vmem [shape: f32[16,2], index: 8, kind: input, shape index: {}]   ;;  %s2944_s9 = inlined_call_operand.vmem [shape: bf16[16,16], index: 9, kind: input, shape index: {}]   ;;  %s2945_s10 = inlined_call_operand.vmem [shape: bf16[64,768], index: 10, kind: input, shape index: {}]   ;;  %s2946_s11 = inlined_call_operand.vmem [shape: f32[16,768], index: 11, kind: output, shape index: {}]  }
   0x1   :  { %v40_v0 = vld [vmem:[%s2935_s0 + $0x8] sm:$0xff]  ;;  %v39_v2 = vld [vmem:[%s2935_s0] sm:$0xff]  ;;  %125 = vmatprep.mubr.bf16.mxu1 %v2307_v3  ;;  %211 = vmatprep.mubr.bf16.mxu0 %v2307_v3  ;;  %v42_v9 = vld [vmem:[%s2935_s0 + $0x18] sm:$0xff]  ;;  %vm2311_vm5 = vmmov 0   ;;  %vm1325_vm6 = vcmask 7168   ;;  %vm1332_vm7 = vcmask 515072  }
   0x2   :  { %v44_v1 = vld [vmem:[%s2935_s0 + $0x28] sm:$0xff]  ;;  %v46_v4 = vpack.c.bf16 %v40_v0, %v40_v0  ;;  %v45_v6 = vpack.c.bf16 %v39_v2, %v39_v2  ;;  %v43_v7 = vld [vmem:[%s2935_s0 + $0x20] sm:$0xff]  ;;  %2203 = vset.pattern.permute.xlu0 %v2307_v3  ;;  %2204 = vset.pattern.permute.xlu1 %v2307_v3  ;;  %v41_v10 = vld [vmem:[%s2935_s0 + $0x10] sm:$0xff]  ;;  %v48_v13 = vpack.c.bf16 %v42_v9, %v42_v9  ;;  %vm1726_vm9 = vcmask 523264  }
   0x3   :  { %v50_v5 = vpack.c.bf16 %v44_v1, %v44_v1  ;;  %v49_v8 = vpack.c.bf16 %v43_v7, %v43_v7  ;;  %v2207_v12 = vld [vmem:[%s2936_s1] sm:$0xff]   ;;  %v47_v14 = vpack.c.bf16 %v41_v10, %v41_v10  ;;  %v54_v19 = vld [vmem:[%s2938_s2 + $0x8] sm:$0xff]  ;;  %v59_v22 = vld [vmem:[%s2938_s2 + $0x30] sm:$0xff]  ;;  %s2308_s1 = smov 16  }
   0x4   :  { %1900 = vmatprep.subr.msk.bf16.mxu1 %vm74_vm0, %v46_v4  ;;  %v76_v11 = vsel %vm74_vm0, %v45_v6, 0  ;;  %v53_v17 = vld [vmem:[%s2938_s2] sm:$0xff]  ;;  %v58_v21 = vld [vmem:[%s2938_s2 + $0x28] sm:$0xff]  ;;  %v63_v26 = vld [vmem:[%s2938_s2 + $0x50] sm:$0xff] }
   0x5   :  { %1904 = vmatprep.subr.msk.bf16.mxu0 %vm74_vm0, %v50_v5  ;;  %94 = vmatpush1.bf16.msra.mxu1 %v76_v11  ;;  %v88_v15 = vsel %vm74_vm0, %v49_v8, 0  ;;  %v82_v16 = vsel %vm74_vm0, %v47_v14, 0  ;;  %v57_v18 = vld [vmem:[%s2938_s2 + $0x20] sm:$0xff]  ;;  %v60_v27 = vld [vmem:[%s2938_s2 + $0x38] sm:$0xff]  ;;  %v55_v48 = vld [vmem:[%s2938_s2 + $0x10] sm:$0xff] }
   0x6   :  { %180 = vmatpush1.bf16.msra.mxu0 %v88_v15  ;;  %1902 = vmatprep.subr.msk.bf16.mxu1 %vm74_vm0, %v48_v13  ;;  %v64_v32 = vld [vmem:[%s2938_s2 + $0x58] sm:$0xff]  ;;  %v61_v55 = vld [vmem:[%s2938_s2 + $0x40] sm:$0xff]  ;;  %v62_v62 = vld [vmem:[%s2938_s2 + $0x48] sm:$0xff]  ;;  %v258_v15 = vlaneseq }
   0x7   :  { %v56_v51 = vld [vmem:[%s2938_s2 + $0x18] sm:$0xff]  ;;  %v2208_v2 = vld [vmem:[%s2937_s3 + $0x8] sm:$0xff]   ;;  %s2309_s2 = smov 112   ;;  %vm1975_vm8 = vmneg %vm1325_vm6 }
   0x8   :  { %1901 = vmatmul.mubr.msk.bf16.vlgmr.msra.gmra.mrb[0].mxu1 %vm70_vm1, %v2207_v12 }
   0x9   :  { %1905 = vmatmul.mubr.msk.bf16.vlgmr.msra.gmra.mrb[0].mxu0 %vm70_vm1, %v2207_v12  ;;  %137 = vmatpush1.bf16.msra.mxu1 %v82_v16  ;;  %v2460_v16 = vand.u32 127, %v258_v15 }
   0xa   :  { %168 = vmatprep.mubr.bf16.mxu1 %v2307_v3  ;;  %411 = vmatprep.mubr.bf16.mxu0 %v2307_v3 }
   0xb   :  { %vm260_vm3 = vcmp.lt.s32.totalorder %v2460_v16, 16  ;;  %vm297_vm4 = vcmp.lt.s32.totalorder %v2460_v16, 112  ;;  %v2218_v16 = vld [vmem:[%s2939_s6 + $0x80] sm:$0xff]  }
  0x10   :  { %1903 = vmatmul.mubr.msk.bf16.vlgmr.msra.gmra.mrb[4].mxu1 %vm70_vm1, %v2207_v12 }
  0x11   :  { %368 = vmatprep.mubr.bf16.mxu1 %v2307_v3 }
  0xdb   :  { %v127_v20 = vpop.f32.mrb[0].mxu1 }
  0xdc   :  { %v128_v23 = vadd.f32 %v127_v20, %v53_v17  ;;  %v213_v24 = vpop.f32.mrb[0].mxu0  ;;  %v129_v25 = vpop.f32.mrb[1].mxu1 }
  0xdd   :  { %v214_v28 = vadd.f32 %v213_v24, %v57_v18  ;;  %v130_v29 = vadd.f32 %v129_v25, %v54_v19  ;;  %v215_v30 = vpop.f32.mrb[1].mxu0  ;;  %v131_v31 = vpop.f32.mrb[2].mxu1 }
  0xde   :  { %v216_v33 = vadd.f32 %v215_v30, %v58_v21  ;;  %v132_v34 = vadd.f32 %v131_v31, %v59_v22  ;;  %v217_v35 = vpop.f32.mrb[2].mxu0  ;;  %v133_v36 = vpop.f32.mrb[3].mxu1  ;;  %v222_v41 = vmax.f32 %v128_v23, 0.0 }
  0xdf   :  { %v226_v37 = vmax.f32 %v214_v28, 0.0  ;;  %v218_v38 = vadd.f32 %v217_v35, %v63_v26  ;;  %v134_v39 = vadd.f32 %v133_v36, %v60_v27  ;;  %v219_v40 = vpop.f32.mrb[3].mxu0  ;;  %v223_v45 = vmax.f32 %v130_v29, 0.0 }
  0xe0   :  { %v227_v42 = vmax.f32 %v216_v33, 0.0  ;;  %v228_v43 = vmax.f32 %v132_v34, 0.0  ;;  %v220_v44 = vadd.f32 %v219_v40, %v64_v32 }
  0xe1   :  { %v232_v46 = vmax.f32 %v218_v38, 0.0  ;;  %v229_v47 = vmax.f32 %v134_v39, 0.0 }
  0xe2   :  { %v321_v49 = vpack.c.bf16 %v228_v43, %v222_v41  ;;  %v233_v50 = vmax.f32 %v220_v44, 0.0  ;;  %v2143_v52 = vpack.i.bf16 %v228_v43, %v222_v41 }
  0xe3   :  { %v325_v53 = vpack.c.bf16 %v232_v46, %v226_v37  ;;  %v170_v54 = vpop.f32.mrb[4].mxu1  ;;  %v322_v56 = vpack.c.bf16 %v229_v47, %v223_v45  ;;  %v2148_v57 = vpack.i.bf16 %v229_v47, %v223_v45  ;;  %v2158_v58 = vpack.i.bf16 %v232_v46, %v226_v37 }
  0xe4   :  { %v171_v59 = vadd.f32 %v170_v54, %v55_v48  ;;  %v172_v60 = vpop.f32.mrb[5].mxu1  ;;  %2144 = vrot.lane.b32.xlu0 %v2143_v52, %s2308_s1  ;;  %v2153_v61 = vpack.i.bf16 %v233_v50, %v227_v42  ;;  %v326_v63 = vpack.c.bf16 %v233_v50, %v227_v42  ;;  %v2209_v42 = vld [vmem:[%s2937_s3] sm:$0xff]  }
  0xe5   :  { %v173_v0 = vadd.f32 %v172_v60, %v56_v51  ;;  %v174_v1 = vpop.f32.mrb[6].mxu1  ;;  %336 = vmatprep.subr.bf16.mxu1 %v322_v56 }
  0xe6   :  { %v224_v4 = vmax.f32 %v171_v59, 0.0  ;;  %2154 = vrot.lane.b32.xlu1 %v2153_v61, %s2308_s1  ;;  %v175_v5 = vadd.f32 %v174_v1, %v61_v55  ;;  %v176_v6 = vpop.f32.mrb[7].mxu1  ;;  %337 = vmatpush1.bf16.msra.mxu1 %v321_v49 }
  0xe7   :  { %v225_v7 = vmax.f32 %v173_v0, 0.0  ;;  %v177_v8 = vadd.f32 %v176_v6, %v62_v62  ;;  %422 = vmatprep.subr.bf16.mxu1 %v326_v63 }
  0xe8   :  { %v230_v9 = vmax.f32 %v175_v5, 0.0  ;;  %2149 = vrot.lane.b32.xlu0 %v2148_v57, %s2308_s1 }
  0xe9   :  { %v231_v10 = vmax.f32 %v177_v8, 0.0  ;;  %1909 = vmatmul.mubr.msk.bf16.vlgmr.msra.gmra.mrb[8].mxu1 %vm332_vm2, %v2208_v2 }
  0xea   :  { %v323_v11 = vpack.c.bf16 %v230_v9, %v224_v4  ;;  %2159 = vrot.lane.b32.xlu1 %v2158_v58, %s2308_s1  ;;  %423 = vmatpush1.bf16.msra.mxu1 %v325_v53  ;;  %v2173_v12 = vpack.i.bf16 %v230_v9, %v224_v4 }
  0xeb   :  { %v324_v13 = vpack.c.bf16 %v231_v10, %v225_v7  ;;  %v2163_v14 = vpack.i.bf16 %v231_v10, %v225_v7  ;;  %454 = vmatprep.mubr.bf16.mxu1 %v2307_v3 }
  0xed   :  { %379 = vmatprep.subr.bf16.mxu0 %v324_v13  ;;  %2164 = vrot.lane.b32.xlu0 %v2163_v14, %s2308_s1 }
  0xee   :  { %2169 = vrot.lane.b32.xlu1 %v2148_v57, %s2309_s2  ;;  %380 = vmatpush1.bf16.msra.mxu0 %v323_v11 }
  0xf1   :  { %2174 = vrot.lane.b32.xlu0 %v2173_v12, %s2309_s2  ;;  %1911 = vmatmul.mubr.msk.bf16.vlgmr.msra.gmra.mrb[12].mxu1 %vm332_vm2, %v2208_v2 }
  0xf2   :  { %2179 = vrot.lane.b32.xlu1 %v2143_v52, %s2309_s2  ;;  %505 = vmatprep.mubr.bf16.mxu1 %v2307_v3 }
  0xf3   :  { %1910 = vmatmul.mubr.msk.bf16.vlgmr.msra.gmra.mrb[4].mxu0 %vm332_vm2, %v2208_v2 }
  0xf4   :  { %548 = vmatprep.mubr.bf16.mxu0 %v2307_v3 }
  0xf5   :  { %2184 = vrot.lane.b32.xlu0 %v2173_v12, %s2308_s1 }
  0xf6   :  { %2194 = vrot.lane.b32.xlu1 %v2163_v14, %s2309_s2 }
  0xf9   :  { %2189 = vrot.lane.b32.xlu0 %v2158_v58, %s2309_s2 }
  0xfa   :  { %2199 = vrot.lane.b32.xlu1 %v2153_v61, %s2309_s2 }
 0x156   :  { %v2145_v17 = vpop.permute.xlu0 %2144 }
 0x157   :  { %v2147_v18 = vunpack.i.h.bf16 %v2145_v17  ;;  %v2146_v19 = vunpack.i.l.bf16 %v2145_v17 }
 0x158   :  { %v2155_v20 = vpop.permute.xlu1 %2154 }
 0x159   :  { %v2157_v21 = vunpack.i.h.bf16 %v2155_v20  ;;  %v2156_v22 = vunpack.i.l.bf16 %v2155_v20 }
 0x15a   :  { %v2150_v23 = vpop.permute.xlu0 %2149 }
 0x15b   :  { %v2152_v24 = vunpack.i.h.bf16 %v2150_v23  ;;  %v2151_v25 = vunpack.i.l.bf16 %v2150_v23  ;;  %v271_v26 = vsel %vm260_vm3, %v2156_v22, %v2146_v19  ;;  %v272_v27 = vsel %vm260_vm3, %v2157_v21, %v2147_v18 }
 0x15c   :  { %v2160_v28 = vpop.permute.xlu1 %2159  ;;  %v312_v34 = vpack.c.bf16 %v272_v27, %v271_v26  ;;  %v2210_v27 = vld [vmem:[%s2937_s3 + $0x10] sm:$0xff]  }
 0x15d   :  { %v2162_v29 = vunpack.i.h.bf16 %v2160_v28  ;;  %v2161_v30 = vunpack.i.l.bf16 %v2160_v28  ;;  %v269_v31 = vsel %vm260_vm3, %v2146_v19, %v2151_v25  ;;  %v270_v32 = vsel %vm260_vm3, %v2147_v18, %v2152_v24 }
 0x15e   :  { %v313_v33 = vpack.c.bf16 %v270_v32, %v269_v31  ;;  %v2212_v31 = vld [vmem:[%s2939_s6] sm:$0xff]   ;;  %v2221_v32 = vld [vmem:[%s2939_s6 + $0xc8] sm:$0xff]  }
 0x15f   :  { %v2165_v35 = vpop.permute.xlu0 %2164  ;;  %v261_v36 = vsel %vm260_vm3, %v2161_v30, %v2156_v22  ;;  %v262_v37 = vsel %vm260_vm3, %v2162_v29, %v2157_v21  ;;  %v2211_v22 = vld [vmem:[%s2939_s6 + $0x40] sm:$0xff]  }
 0x160   :  { %v2170_v38 = vpop.permute.xlu1 %2169  ;;  %v2167_v39 = vunpack.i.h.bf16 %v2165_v35  ;;  %v2166_v40 = vunpack.i.l.bf16 %v2165_v35  ;;  %473 = vmatprep.subr.bf16.mxu1 %v313_v33  ;;  %v317_v41 = vpack.c.bf16 %v262_v37, %v261_v36  ;;  %v2213_v33 = vld [vmem:[%s2939_s6 + $0x48] sm:$0xff]   ;;  %v2225_v36 = vld [vmem:[%s2939_s6 + $0xd0] sm:$0xff]  }
 0x161   :  { %474 = vmatpush1.bf16.msra.mxu1 %v312_v34  ;;  %v2172_v47 = vunpack.i.h.bf16 %v2170_v38  ;;  %v2171_v48 = vunpack.i.l.bf16 %v2170_v38  ;;  %v2222_v34 = vld [vmem:[%s2939_s6 + $0x88] sm:$0xff]   ;;  %v2215_v37 = vld [vmem:[%s2939_s6 + $0x50] sm:$0xff]  }
 0x162   :  { %v264_v43 = vsel %vm260_vm3, %v2167_v39, %v2162_v29  ;;  %v263_v44 = vsel %vm260_vm3, %v2166_v40, %v2161_v30  ;;  %559 = vmatprep.subr.bf16.mxu1 %v317_v41  ;;  %v2217_v29 = vld [vmem:[%s2939_s6 + $0xc0] sm:$0xff]   ;;  %v2214_v35 = vld [vmem:[%s2939_s6 + $0x8] sm:$0xff]   ;;  %v2226_v38 = vld [vmem:[%s2939_s6 + $0x90] sm:$0xff]  }
 0x163   :  { %v316_v45 = vpack.c.bf16 %v264_v43, %v263_v44  ;;  %v2175_v46 = vpop.permute.xlu0 %2174  ;;  %v2220_v41 = vld [vmem:[%s2939_s6 + $0x18] sm:$0xff]   ;;  %v2224_v43 = vld [vmem:[%s2939_s6 + $0x20] sm:$0xff]   ;;  %v2227_v44 = vld [vmem:[%s2939_s6 + $0x68] sm:$0xff]  }
 0x164   :  { %v2180_v49 = vpop.permute.xlu1 %2179  ;;  %v2177_v50 = vunpack.i.h.bf16 %v2175_v46  ;;  %v2176_v51 = vunpack.i.l.bf16 %v2175_v46  ;;  %1913 = vmatmul.mubr.msk.bf16.vlgmr.msra.gmra.mrb[8].mxu1 %vm332_vm2, %v2209_v42  ;;  %v2229_v46 = vld [vmem:[%s2939_s6 + $0xd8] sm:$0xff]  }
 0x165   :  { %v2182_v52 = vunpack.i.h.bf16 %v2180_v49  ;;  %v2181_v53 = vunpack.i.l.bf16 %v2180_v49  ;;  %560 = vmatpush1.bf16.msra.mxu1 %v316_v45  ;;  %591 = vmatprep.mubr.bf16.mxu1 %v2307_v3  ;;  %v2228_v45 = vld [vmem:[%s2939_s6 + $0x28] sm:$0xff]   ;;  %v2232_v49 = vld [vmem:[%s2939_s6 + $0x30] sm:$0xff]  }
 0x166   :  { %v304_v54 = vsel %vm297_vm4, %v2171_v48, %v2176_v51  ;;  %v305_v55 = vsel %vm297_vm4, %v2172_v47, %v2177_v50 }
 0x167   :  { %v2185_v56 = vpop.permute.xlu0 %2184  ;;  %v606_v57 = vpack.c.bf16 %v305_v55, %v304_v54  ;;  %v307_v58 = vsel %vm297_vm4, %v2182_v52, %v2172_v47  ;;  %v306_v59 = vsel %vm297_vm4, %v2181_v53, %v2171_v48  ;;  %v2230_v47 = vld [vmem:[%s2939_s6 + $0x98] sm:$0xff]   ;;  %v2231_v48 = vld [vmem:[%s2939_s6 + $0x70] sm:$0xff]   ;;  %v2237_v54 = vld [vmem:[%s2939_s6 + $0xe8] sm:$0xff]  }
 0x168   :  { %v2195_v60 = vpop.permute.xlu1 %2194  ;;  %v2187_v61 = vunpack.i.h.bf16 %v2185_v56  ;;  %v2186_v62 = vunpack.i.l.bf16 %v2185_v56  ;;  %v605_v6 = vpack.c.bf16 %v307_v58, %v306_v59  ;;  %v2238_v55 = vld [vmem:[%s2939_s6 + $0xa8] sm:$0xff]   ;;  %v2239_v56 = vld [vmem:[%s2939_s6 + $0x140] sm:$0xff]   ;;  %v2242_v58 = vld [vmem:[%s2939_s6 + $0xb0] sm:$0xff]  }
 0x169   :  { %v2197_v63 = vunpack.i.h.bf16 %v2195_v60  ;;  %v2196_v0 = vunpack.i.l.bf16 %v2195_v60  ;;  %619 = vmatprep.subr.bf16.mxu1 %v606_v57  ;;  %v2241_v57 = vld [vmem:[%s2939_s6 + $0xf0] sm:$0xff]   ;;  %v2245_v59 = vld [vmem:[%s2939_s6 + $0xf8] sm:$0xff]  }
 0x16a   :  { %v267_v1 = vsel %vm260_vm3, %v2151_v25, %v2186_v62  ;;  %v268_v2 = vsel %vm260_vm3, %v2152_v24, %v2187_v61  ;;  %v265_v4 = vsel %vm260_vm3, %v2186_v62, %v2166_v40  ;;  %v266_v5 = vsel %vm260_vm3, %v2187_v61, %v2167_v39  ;;  %v2216_v39 = vld [vmem:[%s2939_s6 + $0x10] sm:$0xff]   ;;  %v2219_v40 = vld [vmem:[%s2939_s6 + $0x58] sm:$0xff]   ;;  %v761_v61 = vld [vmem:[%s2940_s4 + $0x8] sm:$0xff] }
 0x16b   :  { %v314_v7 = vpack.c.bf16 %v268_v2, %v267_v1  ;;  %v2190_v8 = vpop.permute.xlu0 %2189  ;;  %v315_v9 = vpack.c.bf16 %v266_v5, %v265_v4  ;;  %v302_v13 = vsel %vm297_vm4, %v2176_v51, %v2196_v0  ;;  %v303_v14 = vsel %vm297_vm4, %v2177_v50, %v2197_v63  ;;  %v2233_v50 = vld [vmem:[%s2939_s6 + $0xe0] sm:$0xff]   ;;  %v2246_v60 = vld [vmem:[%s2939_s6 + $0xb8] sm:$0xff]  }
 0x16c   :  { %v2200_v10 = vpop.permute.xlu1 %2199  ;;  %v2192_v11 = vunpack.i.h.bf16 %v2190_v8  ;;  %v2191_v12 = vunpack.i.l.bf16 %v2190_v8  ;;  %1915 = vmatmul.mubr.msk.bf16.vlgmr.msra.gmra.mrb[12].mxu1 %vm332_vm2, %v2209_v42  ;;  %v607_v23 = vpack.c.bf16 %v303_v14, %v302_v13  ;;  %v2234_v51 = vld [vmem:[%s2939_s6 + $0xa0] sm:$0xff]   ;;  %v767_v2 = vld [vmem:[%s2940_s4 + $0x38] sm:$0xff]  ;;  %v785_v8 = vld [vmem:[%s2941_s5 + $0x8] sm:$0xff] }
 0x16d   :  { %v2202_v15 = vunpack.i.h.bf16 %v2200_v10  ;;  %v2201_v17 = vunpack.i.l.bf16 %v2200_v10  ;;  %620 = vmatpush1.bf16.msra.mxu1 %v605_v6  ;;  %516 = vmatprep.subr.bf16.mxu0 %v315_v9  ;;  %v790_v6 = vld [vmem:[%s2941_s5 + $0x30] sm:$0xff] }
 0x16e   :  { %517 = vmatpush1.bf16.msra.mxu0 %v314_v7  ;;  %v300_v18 = vsel %vm297_vm4, %v2196_v0, %v2191_v12  ;;  %v301_v19 = vsel %vm297_vm4, %v2197_v63, %v2192_v11  ;;  %651 = vmatprep.mubr.bf16.mxu1 %v2307_v3  ;;  %v760_v63 = vld [vmem:[%s2940_s4] sm:$0xff]  ;;  %v766_v0 = vld [vmem:[%s2940_s4 + $0x30] sm:$0xff] }
 0x16f   :  { %v608_v20 = vpack.c.bf16 %v301_v19, %v300_v18  ;;  %v308_v21 = vsel %vm297_vm4, %v2201_v17, %v2181_v53  ;;  %v299_v24 = vsel %vm297_vm4, %v2192_v11, %v2202_v15  ;;  %v298_v25 = vsel %vm297_vm4, %v2191_v12, %v2201_v17  ;;  %v2236_v53 = vld [vmem:[%s2939_s6 + $0x38] sm:$0xff]   ;;  %v784_v12 = vld [vmem:[%s2941_s5] sm:$0xff]  ;;  %v765_v19 = vld [vmem:[%s2940_s4 + $0x28] sm:$0xff] }
 0x170   :  { %v309_v26 = vsel %vm297_vm4, %v2202_v15, %v2182_v52  ;;  %v609_v30 = vpack.c.bf16 %v299_v24, %v298_v25  ;;  %v2235_v52 = vld [vmem:[%s2939_s6 + $0x78] sm:$0xff]   ;;  %v2240_v24 = vld [vmem:[%s2939_s6 + $0x100] sm:$0xff]  }
 0x171   :  { %1914 = vmatmul.mubr.msk.bf16.vlgmr.msra.gmra.mrb[4].mxu0 %vm332_vm2, %v2209_v42  ;;  %662 = vmatprep.subr.bf16.mxu0 %v608_v20  ;;  %v610_v28 = vpack.c.bf16 %v309_v26, %v308_v21  ;;  %v2223_v42 = vld [vmem:[%s2939_s6 + $0x60] sm:$0xff]   ;;  %v791_v11 = vld [vmem:[%s2941_s5 + $0x38] sm:$0xff]  ;;  %v762_v21 = vld [vmem:[%s2940_s4 + $0x10] sm:$0xff] }
 0x172   :  { %663 = vmatpush1.bf16.msra.mxu0 %v607_v23  ;;  %694 = vmatprep.mubr.bf16.mxu0 %v2307_v3 }
 0x173   :  { %705 = vmatprep.subr.bf16.mxu1 %v610_v28  ;;  %2013 = vmatprep.subr.bf16.mxu0 %v2211_v22  ;;  %v763_v22 = vld [vmem:[%s2940_s4 + $0x18] sm:$0xff]  ;;  %v768_v28 = vld [vmem:[%s2940_s4 + $0x40] sm:$0xff] }
 0x174   :  { %1919 = vmatmul.mubr.msk.bf16.vlgmr.msra.gmra.mrb[8].mxu1 %vm332_vm2, %v2210_v27 }
 0x175   :  { %706 = vmatpush1.bf16.msra.mxu1 %v609_v30  ;;  %737 = vmatprep.mubr.bf16.mxu1 %v2307_v3  ;;  %v2243_v30 = vld [vmem:[%s2939_s6 + $0x148] sm:$0xff]  }
 0x176   :  { %2035 = vmatprep.subr.bf16.mxu1 %v2217_v29  ;;  %v771_v29 = vld [vmem:[%s2940_s4 + $0x58] sm:$0xff] }
 0x17c   :  { %1921 = vmatmul.mubr.msk.bf16.vlgmr.msra.gmra.mrb[12].mxu1 %vm332_vm2, %v2210_v27 }
 0x17d   :  { %1920 = vmatmul.mubr.msk.bf16.vlgmr.msra.gmra.mrb[4].mxu0 %vm332_vm2, %v2210_v27  ;;  %2036 = vmatpush3.bf16.msra.mxu1 %v2218_v16 }
 0x17e   :  { %2014 = vmatpush3.bf16.msra.mxu0 %v2212_v31  ;;  %2037 = vmatprep.subr.bf16.mxu1 %v2221_v32 }
 0x17f   :  { %2015 = vmatprep.subr.bf16.mxu0 %v2213_v33  ;;  %v769_v33 = vld [vmem:[%s2940_s4 + $0x48] sm:$0xff] }
 0x181   :  { %2038 = vmatpush3.bf16.msra.mxu1 %v2222_v34  ;;  %v789_v34 = vld [vmem:[%s2941_s5 + $0x28] sm:$0xff] }
 0x182   :  { %2016 = vmatpush3.bf16.msra.mxu0 %v2214_v35  ;;  %2039 = vmatprep.subr.bf16.mxu1 %v2225_v36 }
 0x183   :  { %2017 = vmatprep.subr.bf16.mxu0 %v2215_v37  ;;  %v792_v37 = vld [vmem:[%s2941_s5 + $0x40] sm:$0xff] }
 0x185   :  { %2040 = vmatpush3.bf16.msra.mxu1 %v2226_v38 }
 0x186   :  { %2018 = vmatpush3.bf16.msra.mxu0 %v2216_v39  ;;  %2041 = vmatprep.subr.bf16.mxu1 %v2229_v46  ;;  %v795_v39 = vld [vmem:[%s2941_s5 + $0x58] sm:$0xff]  ;;  %v2244_v46 = vld [vmem:[%s2939_s6 + $0x108] sm:$0xff]  }
 0x187   :  { %2019 = vmatprep.subr.bf16.mxu0 %v2219_v40 }
 0x189   :  { %2042 = vmatpush3.bf16.msra.mxu1 %v2230_v47  ;;  %v786_v47 = vld [vmem:[%s2941_s5 + $0x10] sm:$0xff] }
 0x18a   :  { %2020 = vmatpush3.bf16.msra.mxu0 %v2220_v41  ;;  %2043 = vmatprep.subr.bf16.mxu1 %v2233_v50  ;;  %v787_v41 = vld [vmem:[%s2941_s5 + $0x18] sm:$0xff] }
 0x18b   :  { %2021 = vmatprep.subr.bf16.mxu0 %v2223_v42 }
 0x18d   :  { %2044 = vmatpush3.bf16.msra.mxu1 %v2234_v51 }
 0x18e   :  { %2022 = vmatpush3.bf16.msra.mxu0 %v2224_v43  ;;  %2045 = vmatprep.subr.bf16.mxu1 %v2237_v54 }
 0x18f   :  { %2023 = vmatprep.subr.bf16.mxu0 %v2227_v44 }
 0x191   :  { %2046 = vmatpush3.bf16.msra.mxu1 %v2238_v55 }
 0x192   :  { %2024 = vmatpush3.bf16.msra.mxu0 %v2228_v45  ;;  %2047 = vmatprep.subr.bf16.mxu1 %v2241_v57  ;;  %v793_v45 = vld [vmem:[%s2941_s5 + $0x48] sm:$0xff]  ;;  %v2248_v57 = vld [vmem:[%s2939_s6 + $0x110] sm:$0xff]  }
 0x193   :  { %2025 = vmatprep.subr.bf16.mxu0 %v2231_v48 }
 0x195   :  { %2048 = vmatpush3.bf16.msra.mxu1 %v2242_v58 }
 0x196   :  { %2026 = vmatpush3.bf16.msra.mxu0 %v2232_v49  ;;  %2049 = vmatprep.subr.bf16.mxu1 %v2245_v59  ;;  %v2247_v49 = vld [vmem:[%s2939_s6 + $0x150] sm:$0xff]   ;;  %v2249_v59 = vld [vmem:[%s2939_s6 + $0x158] sm:$0xff]  }
 0x197   :  { %2027 = vmatprep.subr.bf16.mxu0 %v2235_v52 }
 0x199   :  { %2050 = vmatpush3.bf16.msra.mxu1 %v2246_v60 }
 0x19a   :  { %2028 = vmatpush3.bf16.msra.mxu0 %v2236_v53 }
 0x19b   :  { %2057 = vmatprep.subr.bf16.mxu0 %v2239_v56 }
 0x247   :  { %v653_v62 = vpop.f32.mrb[8].mxu1 }
 0x248   :  { %v655_v1 = vpop.f32.mrb[9].mxu1  ;;  %v772_v7 = vmul.f32 %v760_v63, %v653_v62  ;;  %v2251_v62 = vld [vmem:[%s2939_s6 + $0x160] sm:$0xff]  }
 0x249   :  { %v773_v4 = vmul.f32 %v761_v61, %v655_v1  ;;  %v657_v5 = vpop.f32.mrb[10].mxu1  ;;  %v2250_v61 = vld [vmem:[%s2939_s6 + $0x118] sm:$0xff]   ;;  %v2252_v63 = vld [vmem:[%s2939_s6 + $0x120] sm:$0xff]   ;;  %v2254_v1 = vld [vmem:[%s2939_s6 + $0x128] sm:$0xff]  }
 0x24a   :  { %v778_v9 = vmul.f32 %v766_v0, %v657_v5  ;;  %v659_v10 = vpop.f32.mrb[11].mxu1  ;;  %v2657_v18 = vadd.f32 %v784_v12, %v772_v7  ;;  %v2253_v0 = vld [vmem:[%s2939_s6 + $0x168] sm:$0xff]   ;;  %v764_v5 = vld [vmem:[%s2940_s4 + $0x20] sm:$0xff]  ;;  %v2258_v12 = vld [vmem:[%s2939_s6 + $0x138] sm:$0xff]  }
 0x24b   :  { %v779_v13 = vmul.f32 %v767_v2, %v659_v10  ;;  %v2653_v15 = vadd.f32 %v785_v8, %v773_v4  ;;  %v2255_v2 = vld [vmem:[%s2939_s6 + $0x170] sm:$0xff]   ;;  %v2257_v8 = vld [vmem:[%s2939_s6 + $0x178] sm:$0xff]  }
 0x24c   :  { %v2651_v14 = vadd.f32 %v790_v6, %v778_v9  ;;  %v770_v4 = vld [vmem:[%s2940_s4 + $0x50] sm:$0xff] }
 0x24d   :  { %v2655_v17 = vadd.f32 %v791_v11, %v779_v13  ;;  %v2256_v6 = vld [vmem:[%s2939_s6 + $0x130] sm:$0xff]   ;;  %v788_v11 = vld [vmem:[%s2941_s5 + $0x20] sm:$0xff]  ;;  %s2313_s6 = smov 1  }
 0x24e   :  { %v808_v25 = vpack.c.bf16 %v2651_v14, %v2657_v18  ;;  %v794_v9 = vld [vmem:[%s2941_s5 + $0x50] sm:$0xff]  ;;  %s2312_s5 = smov 127  }
 0x24f   :  { %v2662_v20 = vpop.f32.mrb[12].mxu1  ;;  %v809_v23 = vpack.c.bf16 %v2655_v17, %v2653_v15 }
 0x250   :  { %v696_v26 = vpop.f32.mrb[4].mxu0  ;;  %v741_v27 = vpop.f32.mrb[13].mxu1  ;;  %v776_v10 = vmul.f32 %v764_v5, %v2662_v20  ;;  %v2310_v20 = vmov 0.0   ;;  %v2275_v5 = vld [vmem:[%s2945_s10 + $0x60] ss:$24 sps:$4 sm:$0xff]  }
 0x251   :  { %v777_v16 = vmul.f32 %v765_v19, %v741_v27  ;;  %v698_v31 = vpop.f32.mrb[5].mxu0  ;;  %v743_v32 = vpop.f32.mrb[14].mxu1  ;;  %1230 = vmatprep.mubr.bf16.mxu0 %v809_v23  ;;  %v774_v40 = vmul.f32 %v762_v21, %v696_v26  ;;  %2087 = vmatprep.subr.bf16.mxu1 %v2310_v20 }
 0x252   :  { %v775_v35 = vmul.f32 %v763_v22, %v698_v31  ;;  %v700_v36 = vpop.f32.mrb[6].mxu0  ;;  %v745_v38 = vpop.f32.mrb[15].mxu1  ;;  %1231 = vmatmul.mubr.bf16.vlgmr.msra.gmra.mrb[8].mxu0 %v808_v25  ;;  %v782_v7 = vmul.f32 %v770_v4, %v743_v32  ;;  %v2779_v19 = vadd.f32 %v788_v11, %v776_v10  ;;  %v2277_v4 = vld [vmem:[%s2945_s10 + $0x64] ss:$24 sps:$4 sm:$0xff]  }
 0x253   :  { %v780_v42 = vmul.f32 %v768_v28, %v700_v36  ;;  %v783_v43 = vmul.f32 %v771_v29, %v745_v38  ;;  %2058 = vmatpush3.bf16.msra.mxu0 %v2240_v24  ;;  %v702_v44 = vpop.f32.mrb[7].mxu0  ;;  %v2713_v50 = vadd.f32 %v789_v34, %v777_v16  ;;  %v2723_v55 = vadd.f32 %v786_v47, %v774_v40 }
 0x254   :  { %v781_v48 = vmul.f32 %v769_v33, %v702_v44  ;;  %2059 = vmatprep.subr.bf16.mxu0 %v2243_v30  ;;  %v2719_v53 = vadd.f32 %v787_v41, %v775_v35  ;;  %v2777_v13 = vadd.f32 %v794_v9, %v782_v7  ;;  %v2259_v44 = vld [vmem:[%s2942_s7 + $0x8] sm:$0xff]  }
 0x255   :  { %v2715_v51 = vadd.f32 %v792_v37, %v780_v42  ;;  %v2717_v52 = vadd.f32 %v795_v39, %v783_v43 }
 0x256   :  { %v2721_v54 = vadd.f32 %v793_v45, %v781_v48  ;;  %v812_v21 = vpack.c.bf16 %v2777_v13, %v2779_v19  ;;  %v1493_v45 = vld [vmem:[%s2943_s8] sm:$0xff] }
 0x257   :  { %2060 = vmatpush3.bf16.msra.mxu0 %v2244_v46  ;;  %v813_v56 = vpack.c.bf16 %v2717_v52, %v2713_v50  ;;  %v810_v60 = vpack.c.bf16 %v2715_v51, %v2723_v55  ;;  %v1494_v46 = vld [vmem:[%s2943_s8 + $0x8] sm:$0xff] }
 0x258   :  { %2061 = vmatprep.subr.bf16.mxu0 %v2247_v49  ;;  %v811_v58 = vpack.c.bf16 %v2721_v54, %v2719_v53  ;;  %v2260_v49 = vld [vmem:[%s2942_s7] sm:$0xff]  }
 0x259   :  { %1312 = vmatprep.mubr.bf16.mxu0 %v813_v56 }
 0x25a   :  { %1271 = vmatprep.mubr.bf16.mxu1 %v811_v58 }
 0x25b   :  { %2062 = vmatpush3.bf16.msra.mxu0 %v2248_v57  ;;  %1272 = vmatmul.mubr.bf16.vlgmr.msra.gmra.mrb[16].mxu1 %v810_v60  ;;  %v2261_v57 = vld [vmem:[%s2942_s7 + $0x10] sm:$0xff]  }
 0x25c   :  { %2063 = vmatprep.subr.bf16.mxu0 %v2249_v59  ;;  %2089 = vmatprep.mubr.msk.bf16.mxu1 %vm2311_vm5, %v2310_v20 }
 0x25f   :  { %2064 = vmatpush3.bf16.msra.mxu0 %v2250_v61 }
 0x260   :  { %2065 = vmatprep.subr.bf16.mxu0 %v2251_v62  ;;  %v2314_v62 = vmov 1  }
 0x263   :  { %2066 = vmatpush3.bf16.msra.mxu0 %v2252_v63  ;;  %v2263_v63 = vld [vmem:[%s2945_s10] ss:$24 sps:$4 sm:$0xff]  }
 0x264   :  { %2067 = vmatprep.subr.bf16.mxu0 %v2253_v0  ;;  %v2265_v0 = vld [vmem:[%s2945_s10 + $0x4] ss:$24 sps:$4 sm:$0xff]  }
 0x267   :  { %2068 = vmatpush3.bf16.msra.mxu0 %v2254_v1  ;;  %v2271_v1 = vld [vmem:[%s2945_s10 + $0x34] ss:$24 sps:$4 sm:$0xff]  }
 0x268   :  { %2069 = vmatprep.subr.bf16.mxu0 %v2255_v2  ;;  %v2269_v2 = vld [vmem:[%s2945_s10 + $0x30] ss:$24 sps:$4 sm:$0xff]  }
 0x26b   :  { %2070 = vmatpush3.bf16.msra.mxu0 %v2256_v6 }
 0x26c   :  { %2071 = vmatprep.subr.bf16.mxu0 %v2257_v8 }
 0x26f   :  { %2072 = vmatpush3.bf16.msra.mxu0 %v2258_v12 }
 0x270   :  { %2099 = vmatprep.subr.bf16.mxu0 %v2310_v20 }
 0x272   :  { %1313 = vmatmul.mubr.bf16.vlgmr.msra.gmra.mrb[12].mxu0 %v812_v21 }
 0x273   :  { %2101 = vmatprep.mubr.msk.bf16.mxu0 %vm2311_vm5, %v2310_v20 }
 0x325   :  { %v2029_v22 = vpop.f32.mrb[8].mxu0 }
 0x326   :  { %v2030_v23 = vpop.f32.mrb[9].mxu0 }
 0x327   :  { %v2031_v24 = vadd.f32 %v2030_v23, %v2029_v22  ;;  %v2032_v25 = vpop.f32.mrb[10].mxu0 }
 0x328   :  { %v2033_v26 = vpop.f32.mrb[11].mxu0 }
 0x329   :  { %v2034_v27 = vadd.f32 %v2033_v26, %v2032_v25 }
 0x32e   :  { %v2051_v28 = vpop.f32.mrb[16].mxu1 }
 0x32f   :  { %v2052_v29 = vpop.f32.mrb[17].mxu1 }
 0x330   :  { %v2053_v30 = vadd.f32 %v2052_v29, %v2051_v28  ;;  %v2054_v16 = vpop.f32.mrb[18].mxu1 }
 0x331   :  { %v2055_v31 = vpop.f32.mrb[19].mxu1 }
 0x332   :  { %v1274_v32 = vadd.f32 %v2053_v30, %v2031_v24  ;;  %v2056_v33 = vadd.f32 %v2055_v31, %v2054_v16 }
 0x334   :  { %v1277_v34 = vadd.f32 %v2056_v33, %v2034_v27 }
 0x345   :  { %v2073_v35 = vpop.f32.mrb[12].mxu0 }
 0x346   :  { %v2074_v36 = vpop.f32.mrb[13].mxu0 }
 0x347   :  { %v2075_v37 = vadd.f32 %v2074_v36, %v2073_v35  ;;  %v2076_v38 = vpop.f32.mrb[14].mxu0 }
 0x348   :  { %v2077_v39 = vpop.f32.mrb[15].mxu0 }
 0x349   :  { %v1315_v40 = vadd.f32 %v2075_v37, %v1274_v32  ;;  %v2078_v41 = vadd.f32 %v2077_v39, %v2076_v38  ;;  %v2268_v38 = vld [vmem:[%s2945_s10 + $0xc] ss:$24 sps:$4 sm:$0xff]  }
 0x34b   :  { %v1318_v42 = vadd.f32 %v2078_v41, %v1277_v34  ;;  %v2266_v41 = vld [vmem:[%s2945_s10 + $0x8] ss:$24 sps:$4 sm:$0xff]  }
 0x34d   :  { %v1321_v43 = vpack.c.bf16 %v1318_v42, %v1315_v40  ;;  %v2262_v40 = vld [vmem:[%s2944_s9] sm:$0xff]   ;;  %v2274_v42 = vld [vmem:[%s2945_s10 + $0x3c] ss:$24 sps:$4 sm:$0xff]  }
 0x34f   :  { %1330 = vrot.lane.b32.xlu1 %v1321_v43, %s2312_s5  ;;  %1323 = vrot.lane.b32.xlu0 %v1321_v43, %s2313_s6 }
 0x350   :  { %2088 = vmatpush3.bf16.msra.mxu1 %v1321_v43  ;;  %v2272_v43 = vld [vmem:[%s2945_s10 + $0x38] ss:$24 sps:$4 sm:$0xff]  }
 0x351   :  { %2093 = vmatprep.subr.bf16.mxu1 %v2310_v20 }
 0x353   :  { %2090 = vmatmul.mubr.msk.bf16.vlgmr.msra.gmra.mrb[20].mxu1 %vm332_vm2, %v2259_v44  ;;  %1497 = vperm.xlu0 %2203, %v1493_v45   ;;  %v2280_v44 = vld [vmem:[%s2945_s10 + $0x6c] ss:$24 sps:$4 sm:$0xff]  }
 0x354   :  { %2095 = vmatprep.mubr.msk.bf16.mxu1 %vm2311_vm5, %v2310_v20  ;;  %1502 = vperm.xlu1 %2204, %v1494_v46  }
 0x357   :  { %2206 = vset.pattern.permute.xlu0 %v2314_v62 }
 0x358   :  { %2205 = vset.pattern.permute.xlu1 %v2314_v62  ;;  %1529 = vperm.xlu0 %2206, %v1494_v46   ;;  %v2281_v46 = vld [vmem:[%s2945_s10 + $0x90] ss:$24 sps:$4 sm:$0xff]  }
 0x359   :  { %1525 = vperm.xlu1 %2205, %v1493_v45   ;;  %v2278_v45 = vld [vmem:[%s2945_s10 + $0x68] ss:$24 sps:$4 sm:$0xff]  }
 0x3c1   :  { %v1331_v47 = vpop.permute.xlu1 %1330  ;;  %v1324_v48 = vpop.permute.xlu0 %1323 }
 0x3c2   :  { %v1334_v56 = vsel %vm1332_vm7, %v1331_v47, 0  ;;  %2094 = vmatpush3.bf16.msk.msra.mxu1 %vm1975_vm8, %v1324_v48  ;;  %v2283_v47 = vld [vmem:[%s2945_s10 + $0x94] ss:$24 sps:$4 sm:$0xff]  }
 0x3c3   :  { %2100 = vmatpush3.bf16.msra.mxu0 %v1334_v56  ;;  %2105 = vmatprep.subr.bf16.mxu1 %v2310_v20  ;;  %v2286_v48 = vld [vmem:[%s2945_s10 + $0x9c] ss:$24 sps:$4 sm:$0xff]  }
 0x3c4   :  { %1730 = vmatprep.subr.bf16.mxu0 %v2265_v0  ;;  %v2289_v56 = vld [vmem:[%s2945_s10 + $0x14] ss:$24 sps:$4 sm:$0xff]  }
 0x3c5   :  { %2096 = vmatmul.mubr.msk.bf16.vlgmr.msra.gmra.mrb[24].mxu1 %vm332_vm2, %v2260_v49  ;;  %v2284_v49 = vld [vmem:[%s2945_s10 + $0x98] ss:$24 sps:$4 sm:$0xff]  }
 0x3c6   :  { %2102 = vmatmul.mubr.msk.bf16.vlgmr.msra.gmra.mrb[16].mxu0 %vm332_vm2, %v2261_v57  ;;  %2107 = vmatprep.mubr.msk.bf16.mxu1 %vm2311_vm5, %v2310_v20 }
 0x3c7   :  { %1762 = vmatprep.mubr.bf16.mxu0 %v2307_v3  ;;  %1731 = vmatpush1.bf16.msra.mxu0 %v2263_v63 }
 0x3c8   :  { %1732 = vmatprep.subr.bf16.mxu0 %v2271_v1  ;;  %v2287_v1 = vld [vmem:[%s2945_s10 + $0x10] ss:$24 sps:$4 sm:$0xff]  }
 0x3cb   :  { %1733 = vmatpush1.bf16.msra.mxu0 %v2269_v2 }
 0x3cc   :  { %1734 = vmatprep.subr.bf16.mxu0 %v2277_v4  ;;  %v2292_v4 = vld [vmem:[%s2945_s10 + $0x44] ss:$24 sps:$4 sm:$0xff]  }
 0x3cf   :  { %1735 = vmatpush1.bf16.msra.mxu0 %v2275_v5  ;;  %v2290_v5 = vld [vmem:[%s2945_s10 + $0x40] ss:$24 sps:$4 sm:$0xff]  }
 0x3d0   :  { %1736 = vmatprep.subr.bf16.mxu0 %v2283_v47 }
 0x3d2   :  { %v1498_v7 = vpop.permute.xlu0 %1497 }
 0x3d3   :  { %v1503_v25 = vpop.permute.xlu1 %1502  ;;  %1737 = vmatpush1.bf16.msra.mxu0 %v2281_v46 }
 0x3d4   :  { %1816 = vmatprep.subr.bf16.mxu0 %v2289_v56 }
 0x3d8   :  { %v1526_v57 = vpop.permute.xlu1 %1525 }
 0x426   :  { %v1383_v58 = vpop.f32.mrb[20].mxu1 }
 0x427   :  { %v2091_v59 = vpop.f32.mrb[21].mxu1 }
 0x428   :  { %v1386_v60 = vpop.f32.mrb[22].mxu1  ;;  %v1530_v59 = vpop.permute.xlu0 %1529 }
 0x429   :  { %v2092_v61 = vpop.f32.mrb[23].mxu1 }
 0x498   :  { %v1432_v6 = vpop.f32.mrb[24].mxu1 }
 0x499   :  { %v1433_v8 = vadd.f32 %v1432_v6, %v1383_v58  ;;  %v2097_v9 = vpop.f32.mrb[25].mxu1  ;;  %v1484_v10 = vpop.f32.mrb[16].mxu0  ;;  %v2295_v6 = vld [vmem:[%s2945_s10 + $0x74] ss:$24 sps:$4 sm:$0xff]  }
 0x49a   :  { %v1435_v11 = vpop.f32.mrb[26].mxu1  ;;  %v2103_v12 = vpop.f32.mrb[17].mxu0 }
 0x49b   :  { %v1491_v21 = vadd.f32 %v1484_v10, %v1433_v8  ;;  %v1436_v20 = vadd.f32 %v1435_v11, %v1386_v60  ;;  %v2098_v22 = vpop.f32.mrb[27].mxu1  ;;  %v1487_v23 = vpop.f32.mrb[18].mxu0  ;;  %v2298_v8 = vld [vmem:[%s2945_s10 + $0xa4] ss:$24 sps:$4 sm:$0xff]  }
 0x49c   :  { %v2104_v24 = vpop.f32.mrb[19].mxu0 }
 0x49d   :  { %v1492_v26 = vadd.f32 %v1487_v23, %v1436_v20  ;;  %v1505_v27 = vadd.f32 %v1498_v7, %v1491_v21  ;;  %v2293_v7 = vld [vmem:[%s2945_s10 + $0x70] ss:$24 sps:$4 sm:$0xff]  }
 0x49f   :  { %v1982_v28 = vmul.f32 -1.442695, %v1505_v27  ;;  %v1506_v29 = vadd.f32 %v1503_v25, %v1492_v26 }
 0x4a1   :  { %2299 = vpow2.f32 %v1982_v28  ;;  %v1983_v30 = vmul.f32 -1.442695, %v1506_v29 }
 0x4a3   :  { %2301 = vpow2.f32 %v1983_v30 }
 0x4ab   :  { %v2300_v16 = vpop.eup %2299 }
 0x4ac   :  { %v1513_v31 = vadd.f32 1.0, %v2300_v16 }
 0x4ad   :  { %v2302_v32 = vpop.eup %2301 }
 0x4ae   :  { %2303 = vrcp.f32 %v1513_v31  ;;  %v1514_v33 = vadd.f32 1.0, %v2302_v32 }
 0x4b0   :  { %2305 = vrcp.f32 %v1514_v33 }
 0x4b8   :  { %v2304_v34 = vpop.eup %2303 }
 0x4b9   :  { %v1519_v36 = vmul.f32 %v2304_v34, %v1505_v27 }
 0x4ba   :  { %v2306_v35 = vpop.eup %2305 }
 0x4bb   :  { %v1520_v37 = vmul.f32 %v2306_v35, %v1506_v29 }
 0x4bd   :  { %v1523_v39 = vpack.c.bf16 %v1520_v37, %v1519_v36 }
 0x4bf   :  { %2106 = vmatpush3.bf16.msra.mxu1 %v1523_v39 }
 0x4c0   :  { %1773 = vmatprep.subr.bf16.mxu1 %v2268_v38 }
 0x4c2   :  { %2108 = vmatmul.mubr.msk.bf16.vlgmr.msra.gmra.mrb[28].mxu1 %vm332_vm2, %v2262_v40 }
 0x4c3   :  { %1774 = vmatpush1.bf16.msra.mxu1 %v2266_v41  ;;  %1805 = vmatprep.mubr.bf16.mxu1 %v2307_v3 }
 0x4c4   :  { %1775 = vmatprep.subr.bf16.mxu1 %v2274_v42 }
 0x4c7   :  { %1776 = vmatpush1.bf16.msra.mxu1 %v2272_v43 }
 0x4c8   :  { %1777 = vmatprep.subr.bf16.mxu1 %v2280_v44 }
 0x4cb   :  { %1778 = vmatpush1.bf16.msra.mxu1 %v2278_v45 }
 0x4cc   :  { %1779 = vmatprep.subr.bf16.mxu1 %v2286_v48 }
 0x4cf   :  { %1780 = vmatpush1.bf16.msra.mxu1 %v2284_v49 }
 0x595   :  { %v1574_v58 = vpop.f32.mrb[28].mxu1 }
 0x596   :  { %v2109_v60 = vpop.f32.mrb[29].mxu1  ;;  %v1575_v62 = vadd.f32 %v1574_v58, %v1526_v57 }
 0x597   :  { %v1577_v61 = vpop.f32.mrb[30].mxu1 }
 0x598   :  { %v1578_v63 = vadd.f32 %v1577_v61, %v1530_v59  ;;  %v2110_v0 = vpop.f32.mrb[31].mxu1 }
 0x59a   :  { %v1581_v2 = vpack.c.bf16 %v1578_v63, %v1575_v62 }
 0x59c   :  { %2010 = vmatmul.mubr.msk.bf16.vlgmr.msra.gmra.mrb[20].mxu0 %vm1726_vm9, %v1581_v2  ;;  %2011 = vmatmul.mubr.msk.bf16.vlgmr.msra.gmra.mrb[32].mxu1 %vm1726_vm9, %v1581_v2 }
 0x59d   :  { %1817 = vmatpush1.bf16.msra.mxu0 %v2287_v1  ;;  %1848 = vmatprep.mubr.bf16.mxu0 %v2307_v3  ;;  %v2296_v3 = vld [vmem:[%s2945_s10 + $0xa0] ss:$24 sps:$4 sm:$0xff]  }
 0x59e   :  { %1818 = vmatprep.subr.bf16.mxu0 %v2292_v4 }
 0x5a1   :  { %1819 = vmatpush1.bf16.msra.mxu0 %v2290_v5 }
 0x5a2   :  { %1820 = vmatprep.subr.bf16.mxu0 %v2295_v6 }
 0x5a5   :  { %1821 = vmatpush1.bf16.msra.mxu0 %v2293_v7 }
 0x5a6   :  { %1822 = vmatprep.subr.bf16.mxu0 %v2298_v8 }
 0x5a9   :  { %1823 = vmatpush1.bf16.msra.mxu0 %v2296_v3 }
 0x5ac   :  { %2012 = vmatmul.mubr.msk.bf16.vlgmr.msra.gmra.mrb[24].mxu0 %vm1726_vm9, %v1581_v2 }
 0x66f   :  { %v1764_v9 = vpop.f32.mrb[20].mxu0  ;;  %v1807_v10 = vpop.f32.mrb[32].mxu1 }
 0x670   :  { %v1859_v11 = vadd.f32 %v1764_v9, %v2657_v18  ;;  %v1861_v12 = vadd.f32 %v1807_v10, %v2723_v55  ;;  %v1766_v21 = vpop.f32.mrb[21].mxu0  ;;  %v1809_v20 = vpop.f32.mrb[33].mxu1 }
 0x671   :  { %v1860_v22 = vadd.f32 %v1766_v21, %v2653_v15  ;;  %v1862_v23 = vadd.f32 %v1809_v20, %v2719_v53  ;;  %v1768_v24 = vpop.f32.mrb[22].mxu0  ;;  %v1811_v25 = vpop.f32.mrb[34].mxu1 }
 0x672   :  { %v1871_v26 = vmax.f32 %v1859_v11, 0.0  ;;  %v1873_v27 = vmax.f32 %v1861_v12, 0.0  ;;  %v1865_v28 = vadd.f32 %v1768_v24, %v2651_v14  ;;  %v1867_v29 = vadd.f32 %v1811_v25, %v2715_v51  ;;  %v1770_v30 = vpop.f32.mrb[23].mxu0  ;;  %v1813_v16 = vpop.f32.mrb[35].mxu1 }
 0x673   :  { %v1872_v31 = vmax.f32 %v1860_v22, 0.0  ;;  %v1874_v18 = vmax.f32 %v1862_v23, 0.0  ;;  %v1866_v55 = vadd.f32 %v1770_v30, %v2655_v17  ;;  %v1868_v32 = vadd.f32 %v1813_v16, %v2721_v54 }
 0x674   :  { %1883 = vst [vmem:[%s2946_s11] sm:$0xff] %v1871_v26  ;;  %1885 = vst [vmem:[%s2946_s11 + $0x10] sm:$0xff] %v1873_v27  ;;  %v1877_v15 = vmax.f32 %v1865_v28, 0.0  ;;  %v1879_v14 = vmax.f32 %v1867_v29, 0.0 }
 0x675   :  { %1884 = vst [vmem:[%s2946_s11 + $0x8] sm:$0xff] %v1872_v31  ;;  %1886 = vst [vmem:[%s2946_s11 + $0x18] sm:$0xff] %v1874_v18  ;;  %v1878_v17 = vmax.f32 %v1866_v55, 0.0  ;;  %v1880_v51 = vmax.f32 %v1868_v32, 0.0 }
 0x676   :  { %1889 = vst [vmem:[%s2946_s11 + $0x30] sm:$0xff] %v1877_v15  ;;  %1891 = vst [vmem:[%s2946_s11 + $0x40] sm:$0xff] %v1879_v14 }
 0x677   :  { %1890 = vst [vmem:[%s2946_s11 + $0x38] sm:$0xff] %v1878_v17  ;;  %1892 = vst [vmem:[%s2946_s11 + $0x48] sm:$0xff] %v1880_v51 }
 0x67f   :  { %v1850_v53 = vpop.f32.mrb[24].mxu0 }
 0x680   :  { %v1863_v54 = vadd.f32 %v1850_v53, %v2779_v19  ;;  %v1852_v33 = vpop.f32.mrb[25].mxu0 }
 0x681   :  { %v1864_v34 = vadd.f32 %v1852_v33, %v2713_v50  ;;  %v1854_v35 = vpop.f32.mrb[26].mxu0 }
 0x682   :  { %v1875_v36 = vmax.f32 %v1863_v54, 0.0  ;;  %v1869_v37 = vadd.f32 %v1854_v35, %v2777_v13  ;;  %v1856_v38 = vpop.f32.mrb[27].mxu0 }
 0x683   :  { %v1876_v39 = vmax.f32 %v1864_v34, 0.0  ;;  %v1870_v40 = vadd.f32 %v1856_v38, %v2717_v52 }
 0x684   :  { %1887 = vst [vmem:[%s2946_s11 + $0x20] sm:$0xff] %v1875_v36  ;;  %v1881_v41 = vmax.f32 %v1869_v37, 0.0 }
 0x685   :  { %1888 = vst [vmem:[%s2946_s11 + $0x28] sm:$0xff] %v1876_v39  ;;  %v1882_v19 = vmax.f32 %v1870_v40, 0.0 }
 0x686   :  { %1893 = vst [vmem:[%s2946_s11 + $0x50] sm:$0xff] %v1881_v41 }
 0x687   :  { %1894 = vst [vmem:[%s2946_s11 + $0x58] sm:$0xff] %v1882_v19 }

</bundles_post_ra>
